<compile_context>
chip_gen: v7x
topology: tpu7x:2x2x1
jax: 0.10.0
libtpu: 0.0.40
codegen_flags: <defaults>
</compile_context>

<pallas_src>
import functools
import math

import jax
import jax.numpy as jnp
from jax.experimental import pallas as pl
from jax.experimental.pallas import tpu as pltpu

P_APPLY = 0.5
LANE = 128
TARGET_BLOCK_BYTES = 4 * 1024 * 1024       # per-block budget for the BlockSpec path
MANUAL_MAX_SAMPLE_BYTES = 4 * 1024 * 1024  # per-sample VMEM buffer cap, manual path


def _round_up(n, m):
    return ((n + m - 1) // m) * m


def _fold_params(C, HW, itemsize):
    """Spatial->channel fold factor k so C*k fills whole sublane packs."""
    pack = max(8, 32 // itemsize)          # 8 (f32), 16 (bf16/f16), 32 (int8)
    k = pack // math.gcd(C, pack)
    hw_pad = _round_up(max(HW, 1), k * LANE)   # folded spatial dim is a LANE multiple
    return pack, k, hw_pad


# ---------------------------------------------------------------------------
# Primary path: manual DMA + input/output aliasing (skip traffic for gated-off
# samples).  grid=(B,), one whole folded sample per step.
# ---------------------------------------------------------------------------
def _manual_kernel(gates_ref, x_hbm, scale_ref, bias_ref, o_hbm, xbuf, sem, *,
                   compute_dtype):
    b = pl.program_id(0)

    @pl.when(gates_ref[b] != 0)
    def _():
        # Gated-on sample: HBM -> VMEM, transform in place, VMEM -> HBM.
        cp_in = pltpu.make_async_copy(x_hbm.at[b], xbuf, sem.at[0])
        cp_in.start()
        cp_in.wait()
        y = jnp.tanh(xbuf[...].astype(compute_dtype) * scale_ref[...]
                     + bias_ref[...])
        xbuf[...] = y.astype(xbuf.dtype)
        cp_out = pltpu.make_async_copy(xbuf, o_hbm.at[b], sem.at[1])
        cp_out.start()
        cp_out.wait()
        # Gated-off sample: do nothing -- output aliases x, zero bytes moved.


def _manual_path(x_f, scale_f, bias_f, gates, compute_dtype):
    B, Ck, Sf = x_f.shape
    itemsize = jnp.dtype(x_f.dtype).itemsize
    sample_bytes = Ck * Sf * itemsize
    vmem_limit = int(min(48 << 20, max(24 << 20, 5 * sample_bytes + (4 << 20))))
    n_elems = B * Ck * Sf
    cost = pl.CostEstimate(flops=2 * n_elems, transcendentals=n_elems,
                           bytes_accessed=2 * n_elems * itemsize)

    kernel = functools.partial(_manual_kernel, compute_dtype=compute_dtype)
    return pl.pallas_call(
        kernel,
        out_shape=jax.ShapeDtypeStruct((B, Ck, Sf), x_f.dtype),
        grid=(B,),
        in_specs=[
            pl.BlockSpec(memory_space=pltpu.MemorySpace.SMEM),   # gates (B,)
            pl.BlockSpec(memory_space=pl.ANY),                   # x, stays in HBM
            pl.BlockSpec((Ck, 1), lambda b: (0, 0)),             # scale, resident
            pl.BlockSpec((Ck, 1), lambda b: (0, 0)),             # bias, resident
        ],
        out_specs=pl.BlockSpec(memory_space=pl.ANY),             # out, stays in HBM
        scratch_shapes=[
            pltpu.VMEM((Ck, Sf), x_f.dtype),
            pltpu.SemaphoreType.DMA((2,)),
        ],
        input_output_aliases={1: 0},     # out aliases x -> gated-off samples free
        compiler_params=pltpu.CompilerParams(
            dimension_semantics=("parallel",),
            vmem_limit_bytes=vmem_limit,
            has_side_effects=True,
        ),
        cost_estimate=cost,
    )(gates, x_f, scale_f, bias_f)


# ---------------------------------------------------------------------------
# Fallback path (large per-sample footprint): BlockSpec auto-pipelining with
# big lane-dense blocks, channel tiling guard, ragged last block, flat grid.
# ---------------------------------------------------------------------------
def _blockspec_kernel(gates_ref, x_ref, scale_ref, bias_ref, o_ref, *,
                      steps_per_batch, compute_dtype):
    b = pl.program_id(0) // steps_per_batch
    apply_it = gates_ref[b] != 0
    x = x_ref[...]

    @pl.when(apply_it)
    def _():
        y = jnp.tanh(x.astype(compute_dtype) * scale_ref[...] + bias_ref[...])
        o_ref[...] = y.astype(o_ref.dtype)

    @pl.when(jnp.logical_not(apply_it))
    def _():
        o_ref[...] = x


def _blockspec_path(x_f, scale_f, bias_f, gates, compute_dtype, pack):
    B, Ck, Sf = x_f.shape
    itemsize = jnp.dtype(x_f.dtype).itemsize

    # Channel tile (guards the degenerate large-C case), then spatial tile.
    c_tile = min(Ck, max(pack, (TARGET_BLOCK_BYTES // (LANE * itemsize)) // pack * pack))
    t = min(_round_up(Sf, LANE),
            max(LANE, (TARGET_BLOCK_BYTES // (c_tile * itemsize)) // LANE * LANE))
    n_c = pl.cdiv(Ck, c_tile)
    n_s = pl.cdiv(Sf, t)        # ragged last block handled by Pallas (no over-pad)
    steps_per_batch = n_c * n_s
    grid = (B * steps_per_batch,)   # single flat parallel axis -> good TC balance

    def x_map(i):
        b = i // steps_per_batch
        r = i % steps_per_batch
        return (b, r // n_s, r % n_s)

    def sb_map(i):
        r = i % steps_per_batch
        return (r // n_s, 0)

    block_bytes = c_tile * t * itemsize
    vmem_limit = int(min(48 << 20, max(24 << 20, 6 * block_bytes)))
    n_elems = B * Ck * Sf
    cost = pl.CostEstimate(flops=2 * n_elems, transcendentals=n_elems,
                           bytes_accessed=2 * n_elems * itemsize)

    kernel = functools.partial(_blockspec_kernel,
                               steps_per_batch=steps_per_batch,
                               compute_dtype=compute_dtype)
    return pl.pallas_call(
        kernel,
        out_shape=jax.ShapeDtypeStruct((B, Ck, Sf), x_f.dtype),
        grid=grid,
        in_specs=[
            pl.BlockSpec(memory_space=pltpu.MemorySpace.SMEM),   # gates (B,)
            pl.BlockSpec((1, c_tile, t), x_map),
            pl.BlockSpec((c_tile, 1), sb_map),
            pl.BlockSpec((c_tile, 1), sb_map),
        ],
        out_specs=pl.BlockSpec((1, c_tile, t), x_map),
        compiler_params=pltpu.CompilerParams(
            dimension_semantics=("parallel",),
            vmem_limit_bytes=vmem_limit,
        ),
        cost_estimate=cost,
    )(gates, x_f, scale_f, bias_f)


# ---------------------------------------------------------------------------
# Wrapper
# ---------------------------------------------------------------------------
def tensor_random_apply(x, scale, bias, seed, p=P_APPLY):
    """TensorRandomApply forward.  4-D input (B,C,H,W); 3-D input promoted to
    B=1 so a single Bernoulli draw gates the whole tensor (PyTorch 3-D path)."""
    squeeze = x.ndim == 3
    if squeeze:
        x = x[None]
    B, C, H, W = x.shape
    HW = H * W
    itemsize = jnp.dtype(x.dtype).itemsize
    compute_dtype = jnp.bfloat16 if x.dtype == jnp.bfloat16 else jnp.float32

    pack, k, hw_pad = _fold_params(C, HW, itemsize)
    Ck = C * k
    Sf = hw_pad // k

    # Flatten spatial, pad to a multiple of k*LANE, fold k spatial into channel.
    x_flat = x.reshape(B, C, HW)
    if hw_pad != HW:
        x_flat = jnp.pad(x_flat, ((0, 0), (0, 0), (0, hw_pad - HW)))
    x_f = x_flat.reshape(B, Ck, Sf)

    # Channel c of the original layout occupies folded rows c*k .. c*k+k-1.
    scale_f = jnp.repeat(scale.reshape(C).astype(compute_dtype), k).reshape(Ck, 1)
    bias_f = jnp.repeat(bias.reshape(C).astype(compute_dtype), k).reshape(Ck, 1)

    # One Bernoulli(p) gate per batch element (torch.bernoulli), drawn in JAX.
    key = jax.random.PRNGKey(seed)
    gates = jax.random.bernoulli(key, p, shape=(B,)).astype(jnp.int32)

    sample_bytes = Ck * Sf * itemsize
    if sample_bytes <= MANUAL_MAX_SAMPLE_BYTES:
        out_f = _manual_path(x_f, scale_f, bias_f, gates, compute_dtype)
    else:
        out_f = _blockspec_path(x_f, scale_f, bias_f, gates, compute_dtype, pack)

    out = out_f.reshape(B, C, hw_pad)[:, :, :HW].reshape(B, C, H, W)
    return out[0] if squeeze else out


if __name__ == "__main__":
    key = jax.random.PRNGKey(0)
    B, C, H, W = 2, 4, 16, 16

    x = jax.random.normal(key, (B, C, H, W), dtype=jnp.float32)

    # Deterministic "parameters" of the synthetic composed transform.
    scale = jnp.linspace(0.5, 1.5, C, dtype=jnp.float32)
    bias = jnp.linspace(-0.25, 0.25, C, dtype=jnp.float32)

    # Jit the wrapper: the aliased x buffer becomes a jit intermediate, so
    # gated-off samples truly move zero HBM bytes (no defensive copy).
    apply_fn = jax.jit(tensor_random_apply, static_argnames=("seed", "p"))

    out = apply_fn(x, scale, bias, seed=42, p=P_APPLY)
    jax.block_until_ready(out)

    assert out.shape == x.shape and out.dtype == x.dtype

    # Per batch element the output must equal either x or tanh(scale*x+bias).
    y_ref = jnp.tanh(x * scale.reshape(1, C, 1, 1) + bias.reshape(1, C, 1, 1))
    for b in range(B):
        ok_keep = bool(jnp.allclose(out[b], x[b], atol=1e-5))
        ok_xform = bool(jnp.allclose(out[b], y_ref[b], atol=1e-5))
        assert ok_keep or ok_xform, f"batch {b}: not x nor transform(x)"

    # 3-D path: single coin flip gates the whole tensor.
    out3 = apply_fn(x[0], scale, bias, seed=7, p=P_APPLY)
    jax.block_until_ready(out3)
    assert out3.shape == x[0].shape
    ok3 = bool(jnp.allclose(out3, x[0], atol=1e-5)) or bool(
        jnp.allclose(out3, y_ref[0], atol=1e-5)
    )
    assert ok3, "3-D path: not x nor transform(x)"

    print("KERNEL_OK")
</pallas_src>

<mosaic_0001>
module attributes {stable_mosaic.version = 11 : i64} {
  func.func @_manual_kernel(%arg0: i32, %arg1: memref<2xi32, #tpu.memory_space<smem>>, %arg2: memref<2x8x128xf32, #tpu.memory_space<any>>, %arg3: memref<8x1xf32, #tpu.memory_space<vmem>>, %arg4: memref<8x1xf32, #tpu.memory_space<vmem>>, %arg5: memref<2x8x128xf32, #tpu.memory_space<any>>, %arg6: memref<8x128xf32, #tpu.memory_space<vmem>>, %arg7: memref<2x!tpu.dma_semaphore, #tpu.memory_space<semaphore_mem>>) attributes {dimension_semantics = [#tpu.dimension_semantics<parallel>], iteration_bounds = array<i64: 2>, scalar_prefetch = 0 : i64, scratch_operands = 2 : i64, tpu.core_type = #tpu.core_type<tc>, window_params = [{transform_indices = @transform_0, window_bounds = array<i64: 2>}, {}, {pipeline_mode = #tpu.pipeline_mode<synchronous>, transform_indices = @transform_2, window_bounds = array<i64: 8, 1>}, {pipeline_mode = #tpu.pipeline_mode<synchronous>, transform_indices = @transform_3, window_bounds = array<i64: 8, 1>}, {}]} {
    %0 = arith.index_cast %arg0 : i32 to index
    %1 = memref.load %arg1[%0] : memref<2xi32, #tpu.memory_space<smem>>
    %c0_i32 = arith.constant 0 : i32
    %2 = arith.cmpi ne, %1, %c0_i32 : i32
    %3 = arith.extui %2 : i1 to i32
    %c0_i32_0 = arith.constant 0 : i32
    %4 = arith.cmpi ne, %3, %c0_i32_0 : i32
    scf.if %4 {
      %c0_i32_1 = arith.constant 0 : i32
      %c0_i32_2 = arith.constant 0 : i32
      %c0_i32_3 = arith.constant 0 : i32
      %5 = tpu.memref_slice %arg2[%arg0, %c0_i32_2, %c0_i32_3] : memref<2x8x128xf32, #tpu.memory_space<any>> -> memref<1x8x128xf32, #tpu.memory_space<any>>
      %6 = tpu.memref_squeeze %5 : memref<1x8x128xf32, #tpu.memory_space<any>> -> memref<8x128xf32, #tpu.memory_space<any>>
      %7 = tpu.memref_slice %arg7[%c0_i32_1] : memref<2x!tpu.dma_semaphore, #tpu.memory_space<semaphore_mem>> -> memref<1x!tpu.dma_semaphore, #tpu.memory_space<semaphore_mem>>
      %8 = tpu.memref_squeeze %7 : memref<1x!tpu.dma_semaphore, #tpu.memory_space<semaphore_mem>> -> memref<!tpu.dma_semaphore, #tpu.memory_space<semaphore_mem>>
      tpu.enqueue_dma source(%6 : memref<8x128xf32, #tpu.memory_space<any>>) target(%arg6 : memref<8x128xf32, #tpu.memory_space<vmem>>) target_semaphore(%8 : memref<!tpu.dma_semaphore, #tpu.memory_space<semaphore_mem>>)
      %c0_i32_4 = arith.constant 0 : i32
      %c0_i32_5 = arith.constant 0 : i32
      %c0_i32_6 = arith.constant 0 : i32
      %9 = tpu.memref_slice %arg2[%arg0, %c0_i32_5, %c0_i32_6] : memref<2x8x128xf32, #tpu.memory_space<any>> -> memref<1x8x128xf32, #tpu.memory_space<any>>
      %10 = tpu.memref_squeeze %9 : memref<1x8x128xf32, #tpu.memory_space<any>> -> memref<8x128xf32, #tpu.memory_space<any>>
      %11 = tpu.memref_slice %arg7[%c0_i32_4] : memref<2x!tpu.dma_semaphore, #tpu.memory_space<semaphore_mem>> -> memref<1x!tpu.dma_semaphore, #tpu.memory_space<semaphore_mem>>
      %12 = tpu.memref_squeeze %11 : memref<1x!tpu.dma_semaphore, #tpu.memory_space<semaphore_mem>> -> memref<!tpu.dma_semaphore, #tpu.memory_space<semaphore_mem>>
      tpu.wait_dma2 semaphore(%12 : memref<!tpu.dma_semaphore, #tpu.memory_space<semaphore_mem>>) src(%10 : memref<8x128xf32, #tpu.memory_space<any>>) dst(%arg6 : memref<8x128xf32, #tpu.memory_space<vmem>>)
      %c0 = arith.constant 0 : index
      %c0_7 = arith.constant 0 : index
      %13 = vector.load %arg6[%c0, %c0_7] : memref<8x128xf32, #tpu.memory_space<vmem>>, vector<8x128xf32>
      %c0_8 = arith.constant 0 : index
      %c0_9 = arith.constant 0 : index
      %14 = vector.load %arg3[%c0_8, %c0_9] : memref<8x1xf32, #tpu.memory_space<vmem>>, vector<8x1xf32>
      %15 = vector.broadcast %14 : vector<8x1xf32> to vector<8x128xf32>
      %16 = arith.mulf %13, %15 : vector<8x128xf32>
      %c0_10 = arith.constant 0 : index
      %c0_11 = arith.constant 0 : index
      %17 = vector.load %arg4[%c0_10, %c0_11] : memref<8x1xf32, #tpu.memory_space<vmem>>, vector<8x1xf32>
      %18 = vector.broadcast %17 : vector<8x1xf32> to vector<8x128xf32>
      %19 = arith.addf %16, %18 : vector<8x128xf32>
      %20 = math.tanh %19 : vector<8x128xf32>
      %c0_12 = arith.constant 0 : index
      %c0_13 = arith.constant 0 : index
      %21 = vector.load %arg6[%c0_12, %c0_13] : memref<8x128xf32, #tpu.memory_space<vmem>>, vector<8x128xf32>
      tpu.vector_store %arg6[%c0_12, %c0_13], %20 {strides = array<i32>} : memref<8x128xf32, #tpu.memory_space<vmem>>, vector<8x128xf32>,
      %c1_i32 = arith.constant 1 : i32
      %c0_i32_14 = arith.constant 0 : i32
      %c0_i32_15 = arith.constant 0 : i32
      %22 = tpu.memref_slice %arg5[%arg0, %c0_i32_14, %c0_i32_15] : memref<2x8x128xf32, #tpu.memory_space<any>> -> memref<1x8x128xf32, #tpu.memory_space<any>>
      %23 = tpu.memref_squeeze %22 : memref<1x8x128xf32, #tpu.memory_space<any>> -> memref<8x128xf32, #tpu.memory_space<any>>
      %24 = tpu.memref_slice %arg7[%c1_i32] : memref<2x!tpu.dma_semaphore, #tpu.memory_space<semaphore_mem>> -> memref<1x!tpu.dma_semaphore, #tpu.memory_space<semaphore_mem>>
      %25 = tpu.memref_squeeze %24 : memref<1x!tpu.dma_semaphore, #tpu.memory_space<semaphore_mem>> -> memref<!tpu.dma_semaphore, #tpu.memory_space<semaphore_mem>>
      tpu.enqueue_dma source(%arg6 : memref<8x128xf32, #tpu.memory_space<vmem>>) target(%23 : memref<8x128xf32, #tpu.memory_space<any>>) target_semaphore(%25 : memref<!tpu.dma_semaphore, #tpu.memory_space<semaphore_mem>>)
      %c1_i32_16 = arith.constant 1 : i32
      %c0_i32_17 = arith.constant 0 : i32
      %c0_i32_18 = arith.constant 0 : i32
      %26 = tpu.memref_slice %arg5[%arg0, %c0_i32_17, %c0_i32_18] : memref<2x8x128xf32, #tpu.memory_space<any>> -> memref<1x8x128xf32, #tpu.memory_space<any>>
      %27 = tpu.memref_squeeze %26 : memref<1x8x128xf32, #tpu.memory_space<any>> -> memref<8x128xf32, #tpu.memory_space<any>>
      %28 = tpu.memref_slice %arg7[%c1_i32_16] : memref<2x!tpu.dma_semaphore, #tpu.memory_space<semaphore_mem>> -> memref<1x!tpu.dma_semaphore, #tpu.memory_space<semaphore_mem>>
      %29 = tpu.memref_squeeze %28 : memref<1x!tpu.dma_semaphore, #tpu.memory_space<semaphore_mem>> -> memref<!tpu.dma_semaphore, #tpu.memory_space<semaphore_mem>>
      tpu.wait_dma2 semaphore(%29 : memref<!tpu.dma_semaphore, #tpu.memory_space<semaphore_mem>>) src(%arg6 : memref<8x128xf32, #tpu.memory_space<vmem>>) dst(%27 : memref<8x128xf32, #tpu.memory_space<any>>)
    } else {
    }
    return
  }
  func.func @transform_0(%arg0: i32) -> i32 {
    %c0_i32 = arith.constant 0 : i32
    %c0_i32_0 = arith.constant 0 : i32
    return %c0_i32 : i32
  }
  func.func @transform_2(%arg0: i32) -> (i32, i32) {
    %c0_i32 = arith.constant 0 : i32
    %c0_i32_0 = arith.constant 0 : i32
    %c0_i32_1 = arith.constant 0 : i32
    return %c0_i32, %c0_i32_0 : i32, i32
  }
  func.func @transform_3(%arg0: i32) -> (i32, i32) {
    %c0_i32 = arith.constant 0 : i32
    %c0_i32_0 = arith.constant 0 : i32
    %c0_i32_1 = arith.constant 0 : i32
    return %c0_i32, %c0_i32_0 : i32, i32
  }
}

</mosaic_0001>

<bundles_post_ra>
// kernel: tensor_random_apply.1
= control target key start
LH: loop header
LB: loop body
LE: loop exit
PB: predicated region body
PF: predicated region fallthrough
CT: control target
= control target key end

     0   :  { %9 = vsyncpa [#allocation5], 0  ;;  %s360_s15 = smov 0   ;;  %s399_s0 = inlined_call_operand.vmem [shape: s32[2], index: 0, kind: input, shape index: {}]   ;;  %s400_s1 = inlined_call_operand.vmem [shape: f32[2,8,128], index: 1, kind: input, shape index: {}, may-alias: {1,4}]   ;;  %s401_s2 = inlined_call_operand.vmem [shape: f32[8,1], index: 2, kind: input, shape index: {}]   ;;  %s402_s3 = inlined_call_operand.vmem [shape: f32[8,1], index: 3, kind: input, shape index: {}]   ;;  %s403_s4 = inlined_call_operand.vmem [shape: f32[2,8,128], index: 4, kind: output, shape index: {}, may-alias: {1,4}]  }
   0x1 LB: > { %s72_s18 = sshll.u32 %s399_s0, 4  ;;  %s369_s19 = sadd.s32 4294967295, %s331_s15   ;;  %s331_s15 = sphi %s360_s15, %s15_s15   ;;  %s73_s18 = int_to_ptr.vmem [resolvable:$true] %s72_s18 }
   0x2   : > { %p269_p0 = scmp.lt.s32.totalorder %s331_s15, 1  ;;  %p286_p1 = scmp.ge.s32.totalorder %s331_s15, 1 }
   0x3   : > { %p287_p2 = scmp.eq.s32.totalorder %s369_s19, 0  ;;  %s302_s20 = scalar_lea.vmem %s73_s18, 16 }
   0x4   : > { %p303_p4 = scmp.ne.s32.totalorder %s73_s18, %s302_s20  ;;  %p310_p8 = scmp.lt.s32.totalorder %s73_s18, %s73_s18 }
   0x5   : > { %p283_p3 = pnand %p287_p2, %p286_p1  ;;  %p311_p9 = scmp.lt.s32.totalorder %s302_s20, %s302_s20 }
   0x7   : > { %p304_p5 = pneg %p283_p3  ;;  %p312_p10 = por %p311_p9, %p310_p8 }
   0x9   : > { %p305_p6 = pnand %p304_p5, %p303_p4 }
   0xb   : > { %p306_p7 = pneg %p305_p6 }
   0xd   : > { %p313_p11 = pnand %p312_p10, %p306_p7 }
   0xf   : > { %316 = shalt.err (!%p313_p11)
}
  0x10   : > { %s333_s21 = smov [#allocation4]   ;;  %89 = sbr.rel (%p269_p0) target bundleno = 194 (0xc2), region = 32 }
  0x11   : > { %285 = dma.vmem_to_smem (!%p283_p3), %s73_s18, 16, %s333_s21, [#allocation5]  }
  0x17   : > { %322 = dma.done.wait (%p287_p2), [#allocation5], 16  }
  0x18   : > { %324 = vsyncadd (%p287_p2), [#allocation5], 4294967280 }
  0x19   : > { %95 = sfence }
  0x1a   : > { %s102_s22 = sld [smem:[#allocation4 + %s369_s19]] }
  0x20   : > { %p274_p12 = scmp.eq.s32.totalorder %s102_s22, 0 }
  0x21   : > { %s275_s23 = sshll.u32 (!%p274_p12), %s369_s19, 3 }
  0x22   : > { %106 = sbr.rel (%p274_p12) target bundleno = 194 (0xc2), region = 40  ;;  %s108_s26 = scalar_lea.vmem (!%p274_p12), %s400_s1, %s275_s23 }
  0x23   : > { %v141_v0 = vld [vmem:[%s108_s26] sm:$0xff] (!%p274_p12) }
  0x29   : > { %150 = vsyncadd [#allocation3], 128 }
  0x2a   : > { %325 = dma.done.wait [#allocation3], 128 }
  0x2b   : > { %326 = vsyncadd [#allocation3], 4294967168  ;;  %v334_v1 = vmov 0   ;;  %v155_v2 = vld [vmem:[%s401_s2] sm:$0xff]  ;;  %s171_s7 = scalar_lea.vmem %s403_s4, %s275_s23 }
  0x2c   : > { %299 = vset.pattern.permute.xlu0 %v334_v1  ;;  %v162_v3 = vld [vmem:[%s402_s3] sm:$0xff] }
  0x2d   : > { %158 = vperm.xlu0 %299, %v155_v2  }
  0x31   : > { %165 = vperm.xlu0 %299, %v162_v3  }
  0xac   : > { %v159_v4 = vpop.permute.xlu0 %158 }
  0xad   : > { %v161_v5 = vmul.f32 %v159_v4, %v141_v0 }
  0xb0   : > { %v166_v6 = vpop.permute.xlu0 %165 }
  0xb1   : > { %v168_v7 = vadd.f32 %v166_v6, %v161_v5 }
  0xb3   : > { %300 = vtanh.f32 %v168_v7 }
  0xbd   : > { %v301_v8 = vpop.eup %300 }
  0xbe   : > { %206 = vst [vmem:[%s171_s7] sm:$0xff] %v301_v8 }
  0xbf   : > { %214 = vsyncadd [#allocation3 + $0x1], 128 }
  0xc0   : > { %327 = dma.done.wait [#allocation3 + $0x1], 128 }
  0xc1   : > { %328 = vsyncadd [#allocation3 + $0x1], 4294967168 }
  0xc2 PF: > { %s15_s15 = sadd.s32 1, %s331_s15  }
  0xc3   : > { %p12_p13 = scmp.ge.s32.totalorder %s15_s15, 3  }
  0xc5   :  { %14 = sbr.rel (!%p12_p13) target bundleno = 1 (0x1), region = 140 }
  0xcc   :  { %217 = vsyncpa [#allocation5], 1 }
  0xcd   :  { %219 = vsyncpa [#allocation5 + $0x1], 1 }
  0xce   :  { %220 = vsyncmov [#allocation3] }
  0xd1   :  { %s221_s8 = vpop.sfrf %220 }
  0xd2   :  { %p276_p0 = scmp.ne.s32.totalorder %s221_s8, 0 }
  0xd4   :  { %225 = shalt.err (%p276_p0)  }
  0xd5   :  { %227 = vsyncmov [#allocation3 + $0x1] }
  0xd8   :  { %s228_s9 = vpop.sfrf %227 }
  0xd9   :  { %p277_p1 = scmp.ne.s32.totalorder %s228_s9, 0 }
  0xdb   :  { %232 = shalt.err (%p277_p1)  }

</bundles_post_ra>
